<compile_context>
chip_gen: v6e
topology: v6e:2x2x1
jax: 0.10.0
libtpu: 0.0.40
codegen_flags: <defaults>
</compile_context>

<pallas_src>
import numpy as np
import jax
import jax.numpy as jnp
from jax import lax
from jax.experimental import pallas as pl
from jax.experimental.pallas import tpu as pltpu

# ----------------------------- configuration (small demo shapes) ------------------------------
BATCH     = 2
C_IN      = 4      # number of variates
WINDOW    = 16     # window_size
N_KERNELS = 4      # n_kernels
KSIZE     = 3      # kernel_size
EMB       = 32     # emb_size
PAD       = 0
STRIDE    = 1
LAMBDA    = 0.1
LN_EPS    = 1e-5

L_OUT = (WINDOW + 2 * PAD - KSIZE) // STRIDE + 1          # conv output length            = 14
FULL  = (L_OUT - 1) * STRIDE + KSIZE                      # transposed-conv full length   = 16
assert FULL - 2 * PAD == WINDOW, "ConvTranspose crop must reconstruct the window"

NE    = N_KERNELS * EMB                                   # per-channel latent width      = 128
NG    = C_IN * N_KERNELS                                  # number of LayerNorm segments  = 16
M_DIM = C_IN * NE                                         # flattened (c, n, e) width     = 512
WC    = WINDOW * C_IN                                     # flattened (c, w) width        = 64


def _round_up(v, m):
    return (v + m - 1) // m * m


# ----------------------------- the single fused kernel ----------------------------------------
def conv_mvr_kernel(x_ref, noise_ref, wenc_ref, mdec_ref, sbcast_ref, mre_ref, vecs_ref, out_ref):
    f32 = jnp.float32
    dn_t = (((1,), (1,)), ((), ()))          # contract last dims of both operands (A @ B^T)

    zbias  = vecs_ref[0:1, :]                # (1, M_DIM)  fused encoder bias
    gamma  = vecs_ref[1:2, :]                # (1, M_DIM)  LayerNorm weight, tiled per segment
    beta   = vecs_ref[2:3, :]                # (1, M_DIM)  LayerNorm bias,   tiled per segment
    bias12 = vecs_ref[3:4, 0:2 * WC]         # (1, 2*WC)   [decoder bias | redecoder bias]

    x   = x_ref[...]                         # (BT, WC)    channel-major: lane = c*W + w
    sbc = sbcast_ref[...].astype(f32)        # (NG, M_DIM) 0/1 segment-membership matrix

    # ---- encoder: per-channel fused Conv1d(1->N)+Linear(L->E); compact weights, unrolled ------
    z_parts = []
    for c in range(C_IN):
        xc = x[:, c * WINDOW:(c + 1) * WINDOW]                               # (BT, W)
        wc = wenc_ref[c].astype(f32)                                         # (W, NE)
        z_parts.append(jnp.dot(xc, wc, preferred_element_type=f32))          # (BT, NE)
    z = jnp.concatenate(z_parts, axis=-1) + zbias                            # (BT, M_DIM)

    # ---- decoder (x_hat1) + LayerNorm statistics: every dot below depends only on z ----------
    xh1_parts = []
    for c in range(C_IN):
        zc = z[:, c * NE:(c + 1) * NE]                                       # (BT, NE)
        mc = mdec_ref[c].astype(f32)                                         # (W, NE)
        xh1_parts.append(lax.dot_general(zc, mc, dn_t, preferred_element_type=f32))   # (BT, W)
    x_hat1 = jnp.concatenate(xh1_parts, axis=-1)                             # (BT, WC) c-major

    inv_e = 1.0 / EMB
    gmu = lax.dot_general(z,     sbc, dn_t, preferred_element_type=f32) * inv_e   # (BT, NG)
    gsq = lax.dot_general(z * z, sbc, dn_t, preferred_element_type=f32) * inv_e   # (BT, NG)
    gvar = gsq - gmu * gmu                                                   # E[z^2] - E[z]^2
    mu  = jnp.dot(gmu,  sbc, preferred_element_type=f32)                     # (BT, M_DIM)
    var = jnp.dot(gvar, sbc, preferred_element_type=f32)                     # (BT, M_DIM)

    zn = (z - mu) * lax.rsqrt(var + LN_EPS) * gamma + beta                   # LayerNorm(E)
    zn = zn + LAMBDA * noise_ref[...]                                        # z + lambda*randn

    # ---- redecoder (x_hat2): dense fused Linear(E->L)+ConvTranspose1d(C*N->C)+crop; bf16 MXU --
    x_hat2 = lax.dot_general(zn.astype(jnp.bfloat16), mre_ref[...], dn_t,
                             preferred_element_type=f32)                     # (BT, WC) c-major

    # ---- single lane-dense 128-wide store: [x_hat1 | x_hat2] plus both biases ------------------
    out_ref[...] = jnp.concatenate([x_hat1, x_hat2], axis=-1) + bias12


# ----------------------------- wrapper ---------------------------------------------------------
def conv_mvr_forward(x, fp, noise):
    B = x.shape[0]
    # channel-major flattening (lane = c*W + w) so per-channel weights stay compact & contiguous
    x_cm = jnp.transpose(x, (0, 2, 1)).reshape(B, WC).astype(jnp.float32)
    n_cm = noise.reshape(B, M_DIM).astype(jnp.float32)        # (c*N + n)*E + e  == z lane layout

    bt = 128 if B >= 128 else _round_up(B, 8)                 # fill sublanes / MXU rows
    b_pad = _round_up(B, bt)
    if b_pad != B:
        x_cm = jnp.pad(x_cm, ((0, b_pad - B), (0, 0)))
        n_cm = jnp.pad(n_cm, ((0, b_pad - B), (0, 0)))

    def row_spec(w):
        return pl.BlockSpec((bt, w), lambda i: (i, 0))

    def w2_spec(r, c):                                        # grid-invariant: fetched once
        return pl.BlockSpec((r, c), lambda i: (0, 0))

    def w3_spec(a, r, c):
        return pl.BlockSpec((a, r, c), lambda i: (0, 0, 0))

    out = pl.pallas_call(
        conv_mvr_kernel,
        grid=(b_pad // bt,),
        in_specs=[
            row_spec(WC),                     # x      (rows, 64)   channel-major
            row_spec(M_DIM),                  # noise  (rows, 512)
            w3_spec(C_IN, WINDOW, NE),        # fused Conv1d+Linear encoder, per channel (bf16)
            w3_spec(C_IN, WINDOW, NE),        # fused Linear+ConvT decoder,  per channel (bf16)
            w2_spec(NG, M_DIM),               # LayerNorm 0/1 segment matrix (bf16)
            w2_spec(WC, M_DIM),               # fused redecoder, dense (bf16)
            w2_spec(8, M_DIM),                # packed bias / gamma / beta table (f32)
        ],
        out_specs=row_spec(2 * WC),
        out_shape=jax.ShapeDtypeStruct((b_pad, 2 * WC), jnp.float32),
        compiler_params=pltpu.CompilerParams(dimension_semantics=("parallel",)),
    )(x_cm, n_cm, fp["wenc"], fp["mdec"], fp["sbcast"], fp["mre"], fp["vecs"])

    out = out[:B]
    x_hat1 = jnp.transpose(out[:, :WC].reshape(B, C_IN, WINDOW), (0, 2, 1))   # (B, W, C)
    x_hat2 = jnp.transpose(out[:, WC:].reshape(B, C_IN, WINDOW), (0, 2, 1))   # (B, W, C)
    return x_hat1, x_hat2


# ----------------------------- host-side (one-time) weight fusion ------------------------------
def build_fused_params(p):
    C, N, K, E, L, W = C_IN, N_KERNELS, KSIZE, EMB, L_OUT, WINDOW
    Wconv = np.asarray(p["Wconv"], np.float32)   # (C, N, K)   Conv1d(1 -> N)
    bconv = np.asarray(p["bconv"], np.float32)   # (C, N)
    Wenc  = np.asarray(p["Wenc"],  np.float32)   # (C, E, L)   Linear(L -> E)
    benc  = np.asarray(p["benc"],  np.float32)   # (C, E)
    Wdec  = np.asarray(p["Wdec"],  np.float32)   # (C, L, E)   Linear(E -> L)
    bdec  = np.asarray(p["bdec"],  np.float32)   # (C, L)
    Wt    = np.asarray(p["Wt"],    np.float32)   # (C, N, K)   ConvTranspose1d(N -> 1)
    bt    = np.asarray(p["bt"],    np.float32)   # (C,)
    gamma = np.asarray(p["gamma"], np.float32)   # (E,)
    beta  = np.asarray(p["beta"],  np.float32)   # (E,)
    Wre   = np.asarray(p["Wre"],   np.float32)   # (L, E)      redecoder Linear(E -> L)
    bre   = np.asarray(p["bre"],   np.float32)   # (L,)
    Wtre  = np.asarray(p["Wtre"],  np.float32)   # (C*N, C, K) ConvTranspose1d(C*N -> C)
    btre  = np.asarray(p["btre"],  np.float32)   # (C,)

    # --- encoder fusion: Conv1d(1->N, K, stride, pad) + Linear(L->E), per channel (compact) ----
    A = np.zeros((C, W + 2 * PAD, N, E), np.float32)
    for l in range(L):
        for k in range(K):
            A[:, l * STRIDE + k] += Wconv[:, :, k][:, :, None] * Wenc[:, :, l][:, None, :]
    wenc = A[:, PAD:PAD + W].reshape(C, W, NE)                          # (C, W, N*E), no zeros
    zbias = (bconv[:, :, None] * Wenc.sum(axis=2)[:, None, :] + benc[:, None, :]).reshape(M_DIM)

    # --- decoder fusion: Linear(E->L) + ConvTranspose1d(N->1, K) + crop, per channel (compact) -
    Mdec = np.zeros((C, N, E, FULL), np.float32)
    fb1 = np.zeros((C, FULL), np.float32)
    for l in range(L):
        for k in range(K):
            f = l * STRIDE + k
            Mdec[:, :, :, f] += Wt[:, :, k][:, :, None] * Wdec[:, l, :][:, None, :]
            fb1[:, f] += bdec[:, l] * Wt[:, :, k].sum(axis=1)
    mdec = np.transpose(Mdec[:, :, :, PAD:PAD + W].reshape(C, NE, W), (0, 2, 1))   # (C, W, N*E)
    bias1 = (fb1[:, PAD:PAD + W] + bt[:, None]).reshape(WC)                        # c-major

    # --- redecoder fusion: Linear(E->L) + ConvTranspose1d(C*N->C, K) + crop (genuinely dense) --
    Mre = np.zeros((C * N, E, C, FULL), np.float32)
    fb2 = np.zeros((C, FULL), np.float32)
    for l in range(L):
        for k in range(K):
            f = l * STRIDE + k
            Mre[:, :, :, f] += Wre[l][None, :, None] * Wtre[:, None, :, k]
            fb2[:, f] += bre[l] * Wtre[:, :, k].sum(axis=0)
    mre = np.transpose(Mre[:, :, :, PAD:PAD + W], (2, 3, 0, 1)).reshape(WC, M_DIM)  # row=c*W+w
    bias2 = (fb2[:, PAD:PAD + W] + btre[:, None]).reshape(WC)                        # c-major

    # --- LayerNorm(E) segment matrix (reused for mean AND broadcast) + packed vector table -----
    sbcast = np.kron(np.eye(NG, dtype=np.float32), np.ones((1, E), np.float32))      # (NG, M_DIM)
    vecs = np.zeros((8, M_DIM), np.float32)          # one (8,512) table: no (1,N) sublane padding
    vecs[0] = zbias
    vecs[1] = np.tile(gamma, NG)
    vecs[2] = np.tile(beta, NG)
    vecs[3, :WC] = bias1
    vecs[3, WC:2 * WC] = bias2

    return dict(wenc=jnp.asarray(wenc, jnp.bfloat16),
                mdec=jnp.asarray(mdec, jnp.bfloat16),
                sbcast=jnp.asarray(sbcast, jnp.bfloat16),
                mre=jnp.asarray(mre, jnp.bfloat16),
                vecs=jnp.asarray(vecs, jnp.float32))


# ----------------------------- deterministic parameter init ------------------------------------
def init_params(key):
    ks = jax.random.split(key, 12)
    s = 0.1
    Wconv = s * jax.random.normal(ks[0],  (C_IN, N_KERNELS, KSIZE), jnp.float32)  # Conv1d(1,N,K)
    bconv = s * jax.random.normal(ks[1],  (C_IN, N_KERNELS), jnp.float32)
    Wenc  = s * jax.random.normal(ks[2],  (C_IN, EMB, L_OUT), jnp.float32)        # Linear(L,E)
    benc  = s * jax.random.normal(ks[3],  (C_IN, EMB), jnp.float32)
    Wdec  = s * jax.random.normal(ks[4],  (C_IN, L_OUT, EMB), jnp.float32)        # Linear(E,L)
    bdec  = s * jax.random.normal(ks[5],  (C_IN, L_OUT), jnp.float32)
    Wt    = s * jax.random.normal(ks[6],  (C_IN, N_KERNELS, KSIZE), jnp.float32)  # ConvT1d(N,1,K)
    bt    = s * jax.random.normal(ks[7],  (C_IN,), jnp.float32)
    gamma = jnp.ones((EMB,), jnp.float32)                                          # LayerNorm
    beta  = jnp.zeros((EMB,), jnp.float32)
    Wre   = s * jax.random.normal(ks[8],  (L_OUT, EMB), jnp.float32)               # Linear(E,L)
    bre   = s * jax.random.normal(ks[9],  (L_OUT,), jnp.float32)
    Wtre  = s * jax.random.normal(ks[10], (C_IN * N_KERNELS, C_IN, KSIZE), jnp.float32)  # ConvT1d
    btre  = s * jax.random.normal(ks[11], (C_IN,), jnp.float32)

    torch_like = dict(Wconv=Wconv, bconv=bconv, Wenc=Wenc, benc=benc, Wdec=Wdec, bdec=bdec,
                      Wt=Wt, bt=bt, gamma=gamma, beta=beta, Wre=Wre, bre=bre,
                      Wtre=Wtre, btre=btre)
    return torch_like, build_fused_params(torch_like)


# ----------------------------- pure-JAX reference (PyTorch semantics) --------------------------
def reference_forward(x, p, noise):
    HI = lax.Precision.HIGHEST
    B = x.shape[0]
    xp = jnp.pad(x, ((0, 0), (PAD, PAD), (0, 0)))
    idx = jnp.arange(L_OUT)[:, None] * STRIDE + jnp.arange(KSIZE)[None, :]
    z_list, xh1 = [], []
    for c in range(C_IN):
        cols = xp[:, :, c][:, idx]                                                 # (B, L, K)
        conv = jnp.einsum('blk,nk->bnl', cols, p["Wconv"][c], precision=HI) \
               + p["bconv"][c][None, :, None]
        z = jnp.einsum('bnl,el->bne', conv, p["Wenc"][c], precision=HI) + p["benc"][c]
        d = jnp.einsum('bne,le->bnl', z, p["Wdec"][c], precision=HI) + p["bdec"][c]
        full = jnp.zeros((B, FULL), jnp.float32)
        for k in range(KSIZE):
            full = full.at[:, k:k + L_OUT].add(
                jnp.einsum('bnl,n->bl', d, p["Wt"][c][:, k], precision=HI))
        xh1.append((full[:, PAD:PAD + WINDOW] + p["bt"][c])[:, :, None])
        z_list.append(z)
    x_hat1 = jnp.concatenate(xh1, axis=-1)
    zc = jnp.concatenate(z_list, axis=1)
    mu = zc.mean(-1, keepdims=True)
    var = ((zc - mu) ** 2).mean(-1, keepdims=True)
    zn = (zc - mu) / jnp.sqrt(var + LN_EPS) * p["gamma"] + p["beta"]
    zn = zn + LAMBDA * noise
    d2 = jnp.einsum('bme,le->bml', zn, p["Wre"], precision=HI) + p["bre"][None, None, :]
    full2 = jnp.zeros((B, C_IN, FULL), jnp.float32)
    for k in range(KSIZE):
        full2 = full2.at[:, :, k:k + L_OUT].add(
            jnp.einsum('bml,mc->bcl', d2, p["Wtre"][:, :, k], precision=HI))
    x_hat2 = jnp.transpose(full2[:, :, PAD:PAD + WINDOW] + p["btre"][None, :, None], (0, 2, 1))
    return x_hat1, x_hat2


if __name__ == "__main__":
    key = jax.random.PRNGKey(0)
    kx, kn, kw = jax.random.split(key, 3)
    x = jax.random.normal(kx, (BATCH, WINDOW, C_IN), jnp.float32)
    # noise for `z + lambda_ * torch.randn(z.shape)` generated deterministically host-side
    noise = jax.random.normal(kn, (BATCH, NG, EMB), jnp.float32)
    torch_like, fused_params = init_params(kw)

    fwd = jax.jit(conv_mvr_forward)
    x_hat1, x_hat2 = fwd(x, fused_params, noise)
    jax.block_until_ready((x_hat1, x_hat2))

    assert x_hat1.shape == (BATCH, WINDOW, C_IN)
    assert x_hat2.shape == (BATCH, WINDOW, C_IN)
    assert bool(jnp.all(jnp.isfinite(x_hat1))) and bool(jnp.all(jnp.isfinite(x_hat2)))

    r1, r2 = reference_forward(x, torch_like, noise)
    np.testing.assert_allclose(np.asarray(x_hat1), np.asarray(r1), rtol=5e-2, atol=1e-2)
    np.testing.assert_allclose(np.asarray(x_hat2), np.asarray(r2), rtol=5e-2, atol=1e-2)
    print("KERNEL_OK")
</pallas_src>

<mosaic_0001>
module attributes {stable_mosaic.version = 11 : i64} {
  func.func @conv_mvr_kernel(%arg0: i32, %arg1: memref<8x64xf32, #tpu.memory_space<vmem>>, %arg2: memref<8x512xf32, #tpu.memory_space<vmem>>, %arg3: memref<4x16x128xbf16, #tpu.memory_space<vmem>>, %arg4: memref<4x16x128xbf16, #tpu.memory_space<vmem>>, %arg5: memref<16x512xbf16, #tpu.memory_space<vmem>>, %arg6: memref<64x512xbf16, #tpu.memory_space<vmem>>, %arg7: memref<8x512xf32, #tpu.memory_space<vmem>>, %arg8: memref<8x128xf32, #tpu.memory_space<vmem>>) attributes {dimension_semantics = [#tpu.dimension_semantics<parallel>], iteration_bounds = array<i64: 1>, scalar_prefetch = 0 : i64, scratch_operands = 0 : i64, tpu.core_type = #tpu.core_type<tc>, window_params = [{transform_indices = @transform_0, window_bounds = array<i64: 8, 64>}, {transform_indices = @transform_1, window_bounds = array<i64: 8, 512>}, {pipeline_mode = #tpu.pipeline_mode<synchronous>, transform_indices = @transform_2, window_bounds = array<i64: 4, 16, 128>}, {pipeline_mode = #tpu.pipeline_mode<synchronous>, transform_indices = @transform_3, window_bounds = array<i64: 4, 16, 128>}, {pipeline_mode = #tpu.pipeline_mode<synchronous>, transform_indices = @transform_4, window_bounds = array<i64: 16, 512>}, {pipeline_mode = #tpu.pipeline_mode<synchronous>, transform_indices = @transform_5, window_bounds = array<i64: 64, 512>}, {pipeline_mode = #tpu.pipeline_mode<synchronous>, transform_indices = @transform_6, window_bounds = array<i64: 8, 512>}, {transform_indices = @transform_7, window_bounds = array<i64: 8, 128>}]} {
    %c0 = arith.constant 0 : index
    %c0_0 = arith.constant 0 : index
    %0 = vector.load %arg7[%c0, %c0_0] : memref<8x512xf32, #tpu.memory_space<vmem>>, vector<1x512xf32>
    %c1 = arith.constant 1 : index
    %c0_1 = arith.constant 0 : index
    %1 = vector.load %arg7[%c1, %c0_1] : memref<8x512xf32, #tpu.memory_space<vmem>>, vector<1x512xf32>
    %c2 = arith.constant 2 : index
    %c0_2 = arith.constant 0 : index
    %2 = vector.load %arg7[%c2, %c0_2] : memref<8x512xf32, #tpu.memory_space<vmem>>, vector<1x512xf32>
    %c3 = arith.constant 3 : index
    %c0_3 = arith.constant 0 : index
    %3 = vector.load %arg7[%c3, %c0_3] : memref<8x512xf32, #tpu.memory_space<vmem>>, vector<1x128xf32>
    %c0_4 = arith.constant 0 : index
    %c0_5 = arith.constant 0 : index
    %4 = vector.load %arg1[%c0_4, %c0_5] : memref<8x64xf32, #tpu.memory_space<vmem>>, vector<8x64xf32>
    %c0_6 = arith.constant 0 : index
    %c0_7 = arith.constant 0 : index
    %5 = vector.load %arg5[%c0_6, %c0_7] : memref<16x512xbf16, #tpu.memory_space<vmem>>, vector<16x512xbf16>
    %6 = arith.extf %5 : vector<16x512xbf16> to vector<16x512xf32>
    %7 = vector.extract_strided_slice %4 {offsets = [0, 0], sizes = [8, 16], strides = [1, 1]} : vector<8x64xf32> to vector<8x16xf32>
    %c0_8 = arith.constant 0 : index
    %c0_9 = arith.constant 0 : index
    %c0_10 = arith.constant 0 : index
    %8 = vector.load %arg3[%c0_8, %c0_9, %c0_10] : memref<4x16x128xbf16, #tpu.memory_space<vmem>>, vector<1x16x128xbf16>
    %9 = vector.shape_cast %8 : vector<1x16x128xbf16> to vector<16x128xbf16>
    %10 = arith.extf %9 : vector<16x128xbf16> to vector<16x128xf32>
    %cst = arith.constant dense<0.000000e+00> : vector<8x128xf32>
    %11 = tpu.matmul %7, %10, %cst {dimension_numbers = #tpu.dot_dimension_numbers<[1], [0], [0], [1], [0, 0, 1, 1], [], []>} : vector<8x16xf32>, vector<16x128xf32>, vector<8x128xf32> -> vector<8x128xf32>
    %12 = vector.extract_strided_slice %4 {offsets = [0, 16], sizes = [8, 16], strides = [1, 1]} : vector<8x64xf32> to vector<8x16xf32>
    %c1_11 = arith.constant 1 : index
    %c0_12 = arith.constant 0 : index
    %c0_13 = arith.constant 0 : index
    %13 = vector.load %arg3[%c1_11, %c0_12, %c0_13] : memref<4x16x128xbf16, #tpu.memory_space<vmem>>, vector<1x16x128xbf16>
    %14 = vector.shape_cast %13 : vector<1x16x128xbf16> to vector<16x128xbf16>
    %15 = arith.extf %14 : vector<16x128xbf16> to vector<16x128xf32>
    %cst_14 = arith.constant dense<0.000000e+00> : vector<8x128xf32>
    %16 = tpu.matmul %12, %15, %cst_14 {dimension_numbers = #tpu.dot_dimension_numbers<[1], [0], [0], [1], [0, 0, 1, 1], [], []>} : vector<8x16xf32>, vector<16x128xf32>, vector<8x128xf32> -> vector<8x128xf32>
    %17 = vector.extract_strided_slice %4 {offsets = [0, 32], sizes = [8, 16], strides = [1, 1]} : vector<8x64xf32> to vector<8x16xf32>
    %c2_15 = arith.constant 2 : index
    %c0_16 = arith.constant 0 : index
    %c0_17 = arith.constant 0 : index
    %18 = vector.load %arg3[%c2_15, %c0_16, %c0_17] : memref<4x16x128xbf16, #tpu.memory_space<vmem>>, vector<1x16x128xbf16>
    %19 = vector.shape_cast %18 : vector<1x16x128xbf16> to vector<16x128xbf16>
    %20 = arith.extf %19 : vector<16x128xbf16> to vector<16x128xf32>
    %cst_18 = arith.constant dense<0.000000e+00> : vector<8x128xf32>
    %21 = tpu.matmul %17, %20, %cst_18 {dimension_numbers = #tpu.dot_dimension_numbers<[1], [0], [0], [1], [0, 0, 1, 1], [], []>} : vector<8x16xf32>, vector<16x128xf32>, vector<8x128xf32> -> vector<8x128xf32>
    %22 = vector.extract_strided_slice %4 {offsets = [0, 48], sizes = [8, 16], strides = [1, 1]} : vector<8x64xf32> to vector<8x16xf32>
    %c3_19 = arith.constant 3 : index
    %c0_20 = arith.constant 0 : index
    %c0_21 = arith.constant 0 : index
    %23 = vector.load %arg3[%c3_19, %c0_20, %c0_21] : memref<4x16x128xbf16, #tpu.memory_space<vmem>>, vector<1x16x128xbf16>
    %24 = vector.shape_cast %23 : vector<1x16x128xbf16> to vector<16x128xbf16>
    %25 = arith.extf %24 : vector<16x128xbf16> to vector<16x128xf32>
    %cst_22 = arith.constant dense<0.000000e+00> : vector<8x128xf32>
    %26 = tpu.matmul %22, %25, %cst_22 {dimension_numbers = #tpu.dot_dimension_numbers<[1], [0], [0], [1], [0, 0, 1, 1], [], []>} : vector<8x16xf32>, vector<16x128xf32>, vector<8x128xf32> -> vector<8x128xf32>
    %27 = tpu.concatenate %11, %16, %21, %26 in 1 : vector<8x128xf32>, vector<8x128xf32>, vector<8x128xf32>, vector<8x128xf32> -> vector<8x512xf32>
    %28 = vector.broadcast %0 : vector<1x512xf32> to vector<8x512xf32>
    %29 = arith.addf %27, %28 : vector<8x512xf32>
    %30 = vector.extract_strided_slice %29 {offsets = [0, 0], sizes = [8, 128], strides = [1, 1]} : vector<8x512xf32> to vector<8x128xf32>
    %c0_23 = arith.constant 0 : index
    %c0_24 = arith.constant 0 : index
    %c0_25 = arith.constant 0 : index
    %31 = vector.load %arg4[%c0_23, %c0_24, %c0_25] : memref<4x16x128xbf16, #tpu.memory_space<vmem>>, vector<1x16x128xbf16>
    %32 = vector.shape_cast %31 : vector<1x16x128xbf16> to vector<16x128xbf16>
    %33 = arith.extf %32 : vector<16x128xbf16> to vector<16x128xf32>
    %cst_26 = arith.constant dense<0.000000e+00> : vector<8x16xf32>
    %34 = tpu.matmul %30, %33, %cst_26 {dimension_numbers = #tpu.dot_dimension_numbers<[1], [1], [0], [0], [0, 0, 1, 0], [], []>} : vector<8x128xf32>, vector<16x128xf32>, vector<8x16xf32> -> vector<8x16xf32>
    %35 = vector.extract_strided_slice %29 {offsets = [0, 128], sizes = [8, 128], strides = [1, 1]} : vector<8x512xf32> to vector<8x128xf32>
    %c1_27 = arith.constant 1 : index
    %c0_28 = arith.constant 0 : index
    %c0_29 = arith.constant 0 : index
    %36 = vector.load %arg4[%c1_27, %c0_28, %c0_29] : memref<4x16x128xbf16, #tpu.memory_space<vmem>>, vector<1x16x128xbf16>
    %37 = vector.shape_cast %36 : vector<1x16x128xbf16> to vector<16x128xbf16>
    %38 = arith.extf %37 : vector<16x128xbf16> to vector<16x128xf32>
    %cst_30 = arith.constant dense<0.000000e+00> : vector<8x16xf32>
    %39 = tpu.matmul %35, %38, %cst_30 {dimension_numbers = #tpu.dot_dimension_numbers<[1], [1], [0], [0], [0, 0, 1, 0], [], []>} : vector<8x128xf32>, vector<16x128xf32>, vector<8x16xf32> -> vector<8x16xf32>
    %40 = vector.extract_strided_slice %29 {offsets = [0, 256], sizes = [8, 128], strides = [1, 1]} : vector<8x512xf32> to vector<8x128xf32>
    %c2_31 = arith.constant 2 : index
    %c0_32 = arith.constant 0 : index
    %c0_33 = arith.constant 0 : index
    %41 = vector.load %arg4[%c2_31, %c0_32, %c0_33] : memref<4x16x128xbf16, #tpu.memory_space<vmem>>, vector<1x16x128xbf16>
    %42 = vector.shape_cast %41 : vector<1x16x128xbf16> to vector<16x128xbf16>
    %43 = arith.extf %42 : vector<16x128xbf16> to vector<16x128xf32>
    %cst_34 = arith.constant dense<0.000000e+00> : vector<8x16xf32>
    %44 = tpu.matmul %40, %43, %cst_34 {dimension_numbers = #tpu.dot_dimension_numbers<[1], [1], [0], [0], [0, 0, 1, 0], [], []>} : vector<8x128xf32>, vector<16x128xf32>, vector<8x16xf32> -> vector<8x16xf32>
    %45 = vector.extract_strided_slice %29 {offsets = [0, 384], sizes = [8, 128], strides = [1, 1]} : vector<8x512xf32> to vector<8x128xf32>
    %c3_35 = arith.constant 3 : index
    %c0_36 = arith.constant 0 : index
    %c0_37 = arith.constant 0 : index
    %46 = vector.load %arg4[%c3_35, %c0_36, %c0_37] : memref<4x16x128xbf16, #tpu.memory_space<vmem>>, vector<1x16x128xbf16>
    %47 = vector.shape_cast %46 : vector<1x16x128xbf16> to vector<16x128xbf16>
    %48 = arith.extf %47 : vector<16x128xbf16> to vector<16x128xf32>
    %cst_38 = arith.constant dense<0.000000e+00> : vector<8x16xf32>
    %49 = tpu.matmul %45, %48, %cst_38 {dimension_numbers = #tpu.dot_dimension_numbers<[1], [1], [0], [0], [0, 0, 1, 0], [], []>} : vector<8x128xf32>, vector<16x128xf32>, vector<8x16xf32> -> vector<8x16xf32>
    %50 = tpu.concatenate %34, %39, %44, %49 in 1 : vector<8x16xf32>, vector<8x16xf32>, vector<8x16xf32>, vector<8x16xf32> -> vector<8x64xf32>
    %cst_39 = arith.constant dense<0.000000e+00> : vector<8x16xf32>
    %51 = tpu.matmul %29, %6, %cst_39 {dimension_numbers = #tpu.dot_dimension_numbers<[1], [1], [0], [0], [0, 0, 1, 0], [], []>} : vector<8x512xf32>, vector<16x512xf32>, vector<8x16xf32> -> vector<8x16xf32>
    %cst_40 = arith.constant 3.125000e-02 : f32
    %52 = vector.broadcast %cst_40 : f32 to vector<8x16xf32>
    %53 = arith.mulf %51, %52 : vector<8x16xf32>
    %54 = arith.mulf %29, %29 : vector<8x512xf32>
    %cst_41 = arith.constant dense<0.000000e+00> : vector<8x16xf32>
    %55 = tpu.matmul %54, %6, %cst_41 {dimension_numbers = #tpu.dot_dimension_numbers<[1], [1], [0], [0], [0, 0, 1, 0], [], []>} : vector<8x512xf32>, vector<16x512xf32>, vector<8x16xf32> -> vector<8x16xf32>
    %cst_42 = arith.constant 3.125000e-02 : f32
    %56 = vector.broadcast %cst_42 : f32 to vector<8x16xf32>
    %57 = arith.mulf %55, %56 : vector<8x16xf32>
    %58 = arith.mulf %53, %53 : vector<8x16xf32>
    %59 = arith.subf %57, %58 : vector<8x16xf32>
    %cst_43 = arith.constant dense<0.000000e+00> : vector<8x512xf32>
    %60 = tpu.matmul %53, %6, %cst_43 {dimension_numbers = #tpu.dot_dimension_numbers<[1], [0], [0], [1], [0, 0, 1, 1], [], []>} : vector<8x16xf32>, vector<16x512xf32>, vector<8x512xf32> -> vector<8x512xf32>
    %cst_44 = arith.constant dense<0.000000e+00> : vector<8x512xf32>
    %61 = tpu.matmul %59, %6, %cst_44 {dimension_numbers = #tpu.dot_dimension_numbers<[1], [0], [0], [1], [0, 0, 1, 1], [], []>} : vector<8x16xf32>, vector<16x512xf32>, vector<8x512xf32> -> vector<8x512xf32>
    %62 = arith.subf %29, %60 : vector<8x512xf32>
    %cst_45 = arith.constant 9.99999974E-6 : f32
    %63 = vector.broadcast %cst_45 : f32 to vector<8x512xf32>
    %64 = arith.addf %61, %63 : vector<8x512xf32>
    %65 = math.rsqrt %64 : vector<8x512xf32>
    %66 = arith.mulf %62, %65 : vector<8x512xf32>
    %67 = vector.broadcast %1 : vector<1x512xf32> to vector<8x512xf32>
    %68 = arith.mulf %66, %67 : vector<8x512xf32>
    %69 = vector.broadcast %2 : vector<1x512xf32> to vector<8x512xf32>
    %70 = arith.addf %68, %69 : vector<8x512xf32>
    %c0_46 = arith.constant 0 : index
    %c0_47 = arith.constant 0 : index
    %71 = vector.load %arg2[%c0_46, %c0_47] : memref<8x512xf32, #tpu.memory_space<vmem>>, vector<8x512xf32>
    %cst_48 = arith.constant 1.000000e-01 : f32
    %72 = vector.broadcast %cst_48 : f32 to vector<8x512xf32>
    %73 = arith.mulf %72, %71 : vector<8x512xf32>
    %74 = arith.addf %70, %73 : vector<8x512xf32>
    %75 = arith.truncf %74 : vector<8x512xf32> to vector<8x512xbf16>
    %c0_49 = arith.constant 0 : index
    %c0_50 = arith.constant 0 : index
    %76 = vector.load %arg6[%c0_49, %c0_50] : memref<64x512xbf16, #tpu.memory_space<vmem>>, vector<64x512xbf16>
    %cst_51 = arith.constant dense<0.000000e+00> : vector<8x64xf32>
    %77 = tpu.matmul %75, %76, %cst_51 {dimension_numbers = #tpu.dot_dimension_numbers<[1], [1], [0], [0], [0, 0, 1, 0], [], []>} : vector<8x512xbf16>, vector<64x512xbf16>, vector<8x64xf32> -> vector<8x64xf32>
    %78 = tpu.concatenate %50, %77 in 1 : vector<8x64xf32>, vector<8x64xf32> -> vector<8x128xf32>
    %79 = vector.broadcast %3 : vector<1x128xf32> to vector<8x128xf32>
    %80 = arith.addf %78, %79 : vector<8x128xf32>
    %c0_52 = arith.constant 0 : index
    %c0_53 = arith.constant 0 : index
    %81 = vector.load %arg8[%c0_52, %c0_53] : memref<8x128xf32, #tpu.memory_space<vmem>>, vector<8x128xf32>
    tpu.vector_store %arg8[%c0_52, %c0_53], %80 {strides = array<i32>} : memref<8x128xf32, #tpu.memory_space<vmem>>, vector<8x128xf32>,
    return
  }
  func.func @transform_0(%arg0: i32) -> (i32, i32) {
    %c0_i32 = arith.constant 0 : i32
    %c0_i32_0 = arith.constant 0 : i32
    return %arg0, %c0_i32 : i32, i32
  }
  func.func @transform_1(%arg0: i32) -> (i32, i32) {
    %c0_i32 = arith.constant 0 : i32
    %c0_i32_0 = arith.constant 0 : i32
    return %arg0, %c0_i32 : i32, i32
  }
  func.func @transform_2(%arg0: i32) -> (i32, i32, i32) {
    %c0_i32 = arith.constant 0 : i32
    %c0_i32_0 = arith.constant 0 : i32
    %c0_i32_1 = arith.constant 0 : i32
    %c0_i32_2 = arith.constant 0 : i32
    return %c0_i32, %c0_i32_0, %c0_i32_1 : i32, i32, i32
  }
  func.func @transform_3(%arg0: i32) -> (i32, i32, i32) {
    %c0_i32 = arith.constant 0 : i32
    %c0_i32_0 = arith.constant 0 : i32
    %c0_i32_1 = arith.constant 0 : i32
    %c0_i32_2 = arith.constant 0 : i32
    return %c0_i32, %c0_i32_0, %c0_i32_1 : i32, i32, i32
  }
  func.func @transform_4(%arg0: i32) -> (i32, i32) {
    %c0_i32 = arith.constant 0 : i32
    %c0_i32_0 = arith.constant 0 : i32
    %c0_i32_1 = arith.constant 0 : i32
    return %c0_i32, %c0_i32_0 : i32, i32
  }
  func.func @transform_5(%arg0: i32) -> (i32, i32) {
    %c0_i32 = arith.constant 0 : i32
    %c0_i32_0 = arith.constant 0 : i32
    %c0_i32_1 = arith.constant 0 : i32
    return %c0_i32, %c0_i32_0 : i32, i32
  }
  func.func @transform_6(%arg0: i32) -> (i32, i32) {
    %c0_i32 = arith.constant 0 : i32
    %c0_i32_0 = arith.constant 0 : i32
    %c0_i32_1 = arith.constant 0 : i32
    return %c0_i32, %c0_i32_0 : i32, i32
  }
  func.func @transform_7(%arg0: i32) -> (i32, i32) {
    %c0_i32 = arith.constant 0 : i32
    %c0_i32_0 = arith.constant 0 : i32
    return %arg0, %c0_i32 : i32, i32
  }
}

</mosaic_0001>

<bundles_post_ra>
// kernel: conv_mvr_forward.1
= control target key start
LH: loop header
LB: loop body
LE: loop exit
PB: predicated region body
PF: predicated region fallthrough
CT: control target
= control target key end

     0   :  { %12 = vsyncpa [#allocation3], 0  ;;  %s2089_s0 = inlined_call_operand.vmem [shape: f32[8,64], index: 0, kind: input, shape index: {}]   ;;  %s2090_s1 = inlined_call_operand.vmem [shape: f32[8,512], index: 1, kind: input, shape index: {}]   ;;  %s2091_s2 = inlined_call_operand.vmem [shape: bf16[4,16,128], index: 2, kind: input, shape index: {}]   ;;  %s2092_s3 = inlined_call_operand.vmem [shape: bf16[4,16,128], index: 3, kind: input, shape index: {}]   ;;  %s2093_s4 = inlined_call_operand.hbm [shape: bf16[16,512], index: 4, kind: input, shape index: {}]   ;;  %s2094_s5 = inlined_call_operand.hbm [shape: bf16[64,512], index: 5, kind: input, shape index: {}]   ;;  %s2095_s6 = inlined_call_operand.hbm [shape: f32[8,512], index: 6, kind: input, shape index: {}]   ;;  %s2096_s7 = inlined_call_operand.vmem [shape: f32[8,128], index: 7, kind: output, shape index: {}]  }
   0x1   :  { %13 = vsyncpa [#allocation5], 0  ;;  %s1850_s24 = smov [#allocation4]   ;;  %s1851_s26 = smov [#allocation2]  }
   0x2   :  { %s39_s25 = sshll.u32 %s1850_s24, 4  ;;  %s27_s27 = sshll.u32 %s1851_s26, 4  ;;  %s40_s25 = int_to_ptr.vmem [resolvable:$true] %s39_s25  ;;  %s28_s27 = int_to_ptr.vmem [resolvable:$true] %s27_s27 }
   0x3   :  { %s1794_s28 = scalar_lea.vmem %s40_s25, 2048  ;;  %p1799_p1 = scmp.lt.s32.totalorder %s40_s25, %s40_s25 }
   0x4   :  { %p1795_p0 = scmp.ne.s32.totalorder %s40_s25, %s1794_s28  ;;  %p1800_p2 = scmp.lt.s32.totalorder %s1794_s28, %s1794_s28 }
   0x6   :  { %p1801_p3 = por %p1800_p2, %p1799_p1 }
   0x8   :  { %p1802_p4 = pnand %p1801_p3, %p1795_p0 }
   0xa   :  { %1805 = shalt.err (!%p1802_p4)
}
   0xb   :  { %s1852_s29 = smov 256   ;;  %s1853_s30 = smov 16  }
   0xc   :  { %45 = dma.hbm_to_vmem [thread:$0]  %s2094_s5, 2048, %s40_s25, [#allocation5], %s1852_s29, %s1852_s29, %s1853_s30  }
   0xd   :  { %s1814_s10 = scalar_lea.vmem %s28_s27, 512  ;;  %p1819_p6 = scmp.lt.s32.totalorder %s28_s27, %s28_s27 }
   0xe   :  { %p1815_p5 = scmp.ne.s32.totalorder %s28_s27, %s1814_s10  ;;  %p1820_p7 = scmp.lt.s32.totalorder %s1814_s10, %s1814_s10 }
  0x10   :  { %p1821_p8 = por %p1820_p7, %p1819_p6 }
  0x12   :  { %p1822_p9 = pnand %p1821_p8, %p1815_p5 }
  0x14   :  { %1825 = shalt.err (!%p1822_p9)
}
  0x15   :  { %33 = dma.hbm_to_vmem [thread:$0]  %s2093_s4, 512, %s28_s27, [#allocation3], %s1852_s29, %s1852_s29, %s1853_s30  }
  0x16   :  { %s1854_s13 = smov [#allocation6]  }
  0x17   :  { %s52_s14 = sshll.u32 %s1854_s13, 4  ;;  %s53_s14 = int_to_ptr.vmem [resolvable:$true] %s52_s14 }
  0x18   :  { %s1834_s15 = scalar_lea.vmem %s53_s14, 512  ;;  %p1839_p11 = scmp.lt.s32.totalorder %s53_s14, %s53_s14 }
  0x19   :  { %p1835_p10 = scmp.ne.s32.totalorder %s53_s14, %s1834_s15  ;;  %p1840_p12 = scmp.lt.s32.totalorder %s1834_s15, %s1834_s15 }
  0x1b   :  { %p1841_p13 = por %p1840_p12, %p1839_p11 }
  0x1d   :  { %p1842_p0 = pnand %p1841_p13, %p1835_p10 }
  0x1f   :  { %1845 = shalt.err (!%p1842_p0)
}
  0x20   :  { %55 = dma.hbm_to_vmem [thread:$0]  %s2095_s6, 512, %s53_s14, [#allocation5]  }
  0x21   :  { %1846 = dma.done.wait [#allocation3], 512  }
  0x22   :  { %1847 = vsyncadd [#allocation3], 4294966784 }
  0x23   :  { %1848 = dma.done.wait [#allocation5], 2560  }
  0x24   :  { %1849 = vsyncadd [#allocation5], 4294964736  ;;  %v1855_v0 = vmov 0.0   ;;  %vm1856_vm0 = vmmov 0   ;;  %v72_v1 = vld [vmem:[%s2089_s0] sm:$0xff]  ;;  %v1655_v3 = vld [vmem:[%s2091_s2 + $0x8] sm:$0xff]   ;;  %v401_v23 = vlaneseq }
  0x25   :  { %1685 = vmatprep.subr.mxu0 %v1855_v0  ;;  %1689 = vmatprep.mubr.msk.f32.mxu0 %vm1856_vm0, %v1855_v0  ;;  %v1624_v2 = vld [vmem:[%s2091_s2] sm:$0xff]   ;;  %s1857_s21 = smov 112   ;;  %s1858_s22 = smov 80   ;;  %v1630_v6 = vunpack.c.h.bf16 %v1655_v3  ;;  %v1656_v7 = vld [vmem:[%s2091_s2 + $0x10] sm:$0xff]   ;;  %v1629_v8 = vunpack.c.l.bf16 %v1655_v3  ;;  %vm89_vm1 = vcmask 130048   ;;  %v1657_v11 = vld [vmem:[%s2091_s2 + $0x18] sm:$0xff]  }
  0x26   :  { %1692 = vmatprep.subr.mxu1 %v1855_v0  ;;  %1696 = vmatprep.mubr.msk.f32.mxu1 %vm1856_vm0, %v1855_v0  ;;  %v1625_v4 = vunpack.c.l.bf16 %v1624_v2  ;;  %v1626_v5 = vunpack.c.h.bf16 %v1624_v2  ;;  %v1634_v9 = vunpack.c.h.bf16 %v1656_v7  ;;  %s1859_s0 = smov 96   ;;  %v1633_v10 = vunpack.c.l.bf16 %v1656_v7  ;;  %v1640_v13 = vld [vmem:[%s2092_s3] sm:$0xff]   ;;  %v1658_v16 = vld [vmem:[%s2092_s3 + $0x8] sm:$0xff]   ;;  %v1659_v28 = vld [vmem:[%s2092_s3 + $0x10] sm:$0xff]   ;;  %s1861_s12 = smov 48  }
  0x27   :  { %168 = vrot.lane.b32.xlu0 %v72_v1, %s1857_s21  ;;  %326 = vrot.lane.b32.xlu1 %v72_v1, %s1858_s22  ;;  %v1638_v12 = vunpack.c.h.bf16 %v1657_v11  ;;  %v1637_v15 = vunpack.c.l.bf16 %v1657_v11  ;;  %v1642_v18 = vunpack.c.h.bf16 %v1640_v13  ;;  %v1646_v19 = vunpack.c.h.bf16 %v1658_v16  ;;  %v66_v26 = vld [vmem:[#allocation6] ss:$8 sm:$0xf] }
  0x28   :  { %1686 = vmatpush3.msra.mxu0 %v1626_v5  ;;  %1693 = vmatpush3.msra.mxu1 %v1630_v6  ;;  %v1641_v21 = vunpack.c.l.bf16 %v1640_v13  ;;  %v1645_v22 = vunpack.c.l.bf16 %v1658_v16  ;;  %v402_v24 = vshrl.u32 %v401_v23, 7  ;;  %v1650_v30 = vunpack.c.h.bf16 %v1659_v28  ;;  %v75_v33 = vld [vmem:[#allocation2 + $0x10] sm:$0xff]  ;;  %v1660_v38 = vld [vmem:[%s2092_s3 + $0x18] sm:$0xff]   ;;  %v73_v46 = vld [vmem:[#allocation2] sm:$0xff]  ;;  %s1860_s3 = smov 32  }
  0x29   :  { %1687 = vmatprep.subr.mxu0 %v1855_v0  ;;  %1694 = vmatprep.subr.mxu1 %v1855_v0  ;;  %v1649_v34 = vunpack.c.l.bf16 %v1659_v28  ;;  %v1977_v35 = vunpack.c.h.bf16 %v75_v33  ;;  %v1654_v42 = vunpack.c.h.bf16 %v1660_v38  ;;  %v76_v48 = vld [vmem:[#allocation2 + $0x18] sm:$0xff]  ;;  %v1653_v51 = vunpack.c.l.bf16 %v1660_v38  ;;  %v74_v58 = vld [vmem:[#allocation2 + $0x8] sm:$0xff]  ;;  %v1754_v28 = vld [vmem:[#allocation4 + $0x60] ss:$16 sps:$4 sm:$0xff]  }
  0x2a   :  { %1688 = vmatpush3.msra.mxu0 %v1625_v4  ;;  %1695 = vmatpush3.msra.mxu1 %v1629_v8  ;;  %v1965_v25 = vsub.s32 0, %v402_v24  ;;  %v1980_v36 = vsub.s32 1, %v402_v24  ;;  %v1986_v39 = vsub.s32 2, %v402_v24  ;;  %v1988_v40 = vsub.s32 3, %v402_v24  ;;  %v1771_v38 = vld [vmem:[#allocation4 + $0x2c] ss:$16 sps:$4 sm:$0xff]  }
  0x2b   :  { %247 = vrot.lane.b32.xlu0 %v72_v1, %s1859_s0  ;;  %1690 = vmatmul.mubr.msk.f32.vlgmr.msra.gmra.mxu0 %vm89_vm1, %v72_v1  ;;  %v1995_v52 = vunpack.c.l.bf16 %v75_v33  ;;  %v2002_v54 = vunpack.c.h.bf16 %v73_v46  ;;  %v84_v57 = vunpack.c.h.bf16 %v76_v48  ;;  %v2008_v60 = vunpack.c.l.bf16 %v73_v46  ;;  %v1762_v33 = vld [vmem:[#allocation4 + $0x44] ss:$16 sps:$4 sm:$0xff]   ;;  %v1772_v46 = vld [vmem:[#allocation4] ss:$16 sps:$4 sm:$0xff]  }
  0x2c   :  { %1699 = vmatprep.subr.mxu0 %v1855_v0  ;;  %1706 = vmatprep.subr.mxu1 %v1855_v0  ;;  %v404_v27 = vrot.slane %v66_v26, %v1965_v25  ;;  %v408_v37 = vrot.slane %v66_v26, %v1980_v36  ;;  %v412_v44 = vrot.slane %v66_v26, %v1986_v39  ;;  %v2010_v61 = vunpack.c.l.bf16 %v76_v48 }
  0x2d   :  { %1700 = vmatpush3.msra.mxu0 %v1634_v9  ;;  %1703 = vmatprep.mubr.msk.f32.mxu0 %vm1856_vm0, %v1855_v0  ;;  %v416_v47 = vrot.slane %v66_v26, %v1988_v40  ;;  %v2014_v62 = vunpack.c.h.bf16 %v74_v58  ;;  %v79_v63 = vunpack.c.l.bf16 %v74_v58  ;;  %vm737_vm2 = vcmask 261120  }
  0x2e   :  { %1701 = vmatprep.subr.mxu0 %v1855_v0  ;;  %vm739_vm3 = vcmask 392192   ;;  %vm1577_vm4 = vcmask 523264  }
  0x2f   :  { %1702 = vmatpush3.msra.mxu0 %v1633_v10 }
  0x30   :  { %1713 = vmatprep.subr.mxu0 %v1855_v0 }
  0x99   :  { %v169_v14 = vpop.permute.xlu0 %168  ;;  %v327_v17 = vpop.permute.xlu1 %326 }
  0x9a   :  { %1697 = vmatmul.mubr.msk.f32.vlgmr.msra.gmra.mxu1 %vm89_vm1, %v169_v14 }
  0x9b   :  { %1707 = vmatpush3.msra.mxu1 %v1638_v12  ;;  %1710 = vmatprep.mubr.msk.f32.mxu1 %vm1856_vm0, %v1855_v0 }
  0x9c   :  { %1708 = vmatprep.subr.mxu1 %v1855_v0 }
  0x9d   :  { %v248_v20 = vpop.permute.xlu0 %247  ;;  %1709 = vmatpush3.msra.mxu1 %v1637_v15 }
  0x9e   :  { %1704 = vmatmul.mubr.msk.f32.vlgmr.msra.gmra.mxu0 %vm89_vm1, %v248_v20  ;;  %1711 = vmatmul.mubr.msk.f32.vlgmr.msra.gmra.mxu1 %vm89_vm1, %v327_v17 }
  0x9f   :  { %1714 = vmatpush3.xpose.msra.mxu0 %v1642_v18  ;;  %1720 = vmatprep.subr.mxu1 %v1855_v0 }
  0xa0   :  { %1715 = vmatprep.subr.mxu0 %v1855_v0  ;;  %1721 = vmatpush3.xpose.msra.mxu1 %v1646_v19 }
  0xa1   :  { %1717 = vmatprep.mubr.msk.f32.mxu0 %vm1856_vm0, %v1855_v0  ;;  %1722 = vmatprep.subr.mxu1 %v1855_v0 }
  0xa2   :  { %1724 = vmatprep.mubr.msk.f32.mxu1 %vm1856_vm0, %v1855_v0 }
  0xa3   :  { %1716 = vmatpush3.xpose.msra.mxu0 %v1641_v21 }
  0xa4   :  { %1727 = vmatprep.subr.mxu0 %v1855_v0  ;;  %1723 = vmatpush3.xpose.msra.mxu1 %v1645_v22 }
  0xa5   :  { %1734 = vmatprep.subr.mxu1 %v1855_v0 }
  0xeb   :  { %v159_v29 = vpop.f32.mrf.mxu0 }
  0xec   :  { %v1971_v31 = vadd.f32 %v404_v27, %v159_v29  ;;  %v1756_v29 = vld [vmem:[#allocation4 + $0x64] ss:$16 sps:$4 sm:$0xff]  }
  0xed   :  { %v1691_v32 = vpop.f32.mrf.mxu0 }
  0xee   :  { %1718 = vmatmul.mubr.f32.vlgmr.msra.gmra.mxu0 %v1971_v31  ;;  %v882_v3 = vmul.f32 %v1971_v31, %v1971_v31  ;;  %v1759_v32 = vld [vmem:[#allocation4 + $0x6c] ss:$16 sps:$4 sm:$0xff]  }
  0xef   :  { %1728 = vmatpush3.xpose.msra.mxu0 %v1650_v30  ;;  %1731 = vmatprep.mubr.msk.f32.mxu0 %vm1856_vm0, %v1855_v0  ;;  %v1757_v30 = vld [vmem:[#allocation4 + $0x68] ss:$16 sps:$4 sm:$0xff]  }
  0xf0   :  { %1729 = vmatprep.subr.mxu0 %v1855_v0 }
  0xf3   :  { %1730 = vmatpush3.xpose.msra.mxu0 %v1649_v34  ;;  %v1765_v34 = vld [vmem:[#allocation4 + $0x4c] ss:$16 sps:$4 sm:$0xff]  }
  0xf4   :  { %769 = vmatprep.subr.mxu0 %v1977_v35 }
 0x15a   :  { %v238_v41 = vpop.f32.mrf.mxu1 }
 0x15b   :  { %v1990_v43 = vadd.f32 %v408_v37, %v238_v41  ;;  %v1768_v37 = vld [vmem:[#allocation4 + $0x24] ss:$16 sps:$4 sm:$0xff]   ;;  %v1766_v41 = vld [vmem:[#allocation4 + $0x20] ss:$16 sps:$4 sm:$0xff]  }
 0x15c   :  { %v1698_v45 = vpop.f32.mrf.mxu1 }
 0x15d   :  { %1725 = vmatmul.mubr.f32.vlgmr.msra.gmra.mxu1 %v1990_v43  ;;  %v883_v1 = vmul.f32 %v1990_v43, %v1990_v43  ;;  %v1777_v45 = vld [vmem:[#allocation4 + $0xc] ss:$16 sps:$4 sm:$0xff]  }
 0x15e   :  { %1735 = vmatpush3.xpose.msra.mxu1 %v1654_v42  ;;  %v317_v49 = vpop.f32.mrf.mxu0  ;;  %v396_v50 = vpop.f32.mrf.mxu1  ;;  %1738 = vmatprep.mubr.msk.f32.mxu1 %vm1856_vm0, %v1855_v0  ;;  %v1769_v42 = vld [vmem:[#allocation4 + $0x28] ss:$16 sps:$4 sm:$0xff]  }
 0x15f   :  { %v1999_v53 = vadd.f32 %v412_v44, %v317_v49  ;;  %1736 = vmatprep.subr.mxu1 %v1855_v0  ;;  %v2004_v59 = vadd.f32 %v416_v47, %v396_v50  ;;  %v1774_v44 = vld [vmem:[#allocation4 + $0x4] ss:$16 sps:$4 sm:$0xff]   ;;  %v1775_v47 = vld [vmem:[#allocation4 + $0x8] ss:$16 sps:$4 sm:$0xff]  }
 0x160   :  { %v1705_v55 = vpop.f32.mrf.mxu0  ;;  %v1712_v56 = vpop.f32.mrf.mxu1 }
 0x161   :  { %1732 = vmatmul.mubr.f32.vlgmr.msra.gmra.mxu0 %v1999_v53  ;;  %v885_v2 = vmul.f32 %v2004_v59, %v2004_v59  ;;  %v884_v4 = vmul.f32 %v1999_v53, %v1999_v53 }
 0x162   :  { %1737 = vmatpush3.xpose.msra.mxu1 %v1653_v51  ;;  %770 = vmatpush1.xpose.msra.mxu0 %v1995_v52 }
 0x163   :  { %805 = vmatprep.mubr.f32.mxu0 %v1990_v43  ;;  %771 = vmatprep.subr.mxu0 %v2002_v54 }
 0x164   :  { %839 = vmatprep.subr.mxu1 %v84_v57 }
 0x165   :  { %1739 = vmatmul.mubr.f32.vlgmr.msra.gmra.mxu1 %v2004_v59 }
 0x166   :  { %772 = vmatpush1.xpose.msra.mxu0 %v2008_v60  ;;  %840 = vmatpush1.xpose.msra.mxu1 %v2010_v61 }
 0x167   :  { %875 = vmatprep.mubr.f32.mxu1 %v2004_v59  ;;  %841 = vmatprep.subr.mxu1 %v2014_v62 }
 0x168   :  { %914 = vmatprep.subr.mxu0 %v1977_v35 }
 0x169   :  { %806 = vmatmul.mubr.f32.vlgmr.msra.gmra.mxu0 %v1971_v31 }
 0x16a   :  { %842 = vmatpush1.xpose.msra.mxu1 %v79_v63  ;;  %915 = vmatpush1.xpose.msra.mxu0 %v1995_v52 }
 0x16b   :  { %950 = vmatprep.mubr.f32.mxu0 %v883_v1  ;;  %916 = vmatprep.subr.mxu0 %v2002_v54 }
 0x16c   :  { %984 = vmatprep.subr.mxu1 %v84_v57 }
 0x16d   :  { %876 = vmatmul.mubr.f32.vlgmr.msra.gmra.mxu1 %v1999_v53 }
 0x16e   :  { %917 = vmatpush1.xpose.msra.mxu0 %v2008_v60  ;;  %985 = vmatpush1.xpose.msra.mxu1 %v2010_v61 }
 0x16f   :  { %1020 = vmatprep.mubr.f32.mxu1 %v885_v2  ;;  %986 = vmatprep.subr.mxu1 %v2014_v62 }
 0x170   :  { %1060 = vmatprep.subr.mxu0 %v1977_v35 }
 0x171   :  { %951 = vmatmul.mubr.f32.vlgmr.msra.gmra.mxu0 %v882_v3 }
 0x172   :  { %987 = vmatpush1.xpose.msra.mxu1 %v79_v63  ;;  %1061 = vmatpush1.msra.mxu0 %v1995_v52 }
 0x173   :  { %1131 = vmatprep.subr.mxu1 %v84_v57  ;;  %1062 = vmatprep.subr.mxu0 %v2002_v54 }
 0x174   :  { %1063 = vmatpush1.msra.mxu0 %v2008_v60  ;;  %1096 = vmatprep.mubr.f32.mxu0 %v1855_v0 }
 0x175   :  { %1021 = vmatmul.mubr.f32.vlgmr.msra.gmra.mxu1 %v884_v4  ;;  %1209 = vmatprep.subr.mxu0 %v1977_v35  ;;  %v1760_v35 = vld [vmem:[#allocation4 + $0x40] ss:$16 sps:$4 sm:$0xff]  }
 0x176   :  { %1132 = vmatpush1.msra.mxu1 %v2010_v61  ;;  %1167 = vmatprep.mubr.f32.mxu1 %v1855_v0 }
 0x177   :  { %1133 = vmatprep.subr.mxu1 %v2014_v62 }
 0x178   :  { %1134 = vmatpush1.msra.mxu1 %v79_v63 }
 0x179   :  { %1280 = vmatprep.subr.mxu1 %v84_v57 }
 0x1ae   :  { %v2046_v5 = vpop.f32.mrf.mxu0 }
 0x1b0   :  { %v1719_v6 = vpop.f32.mrf.mxu0 }
 0x21d   :  { %v570_v7 = vpop.f32.mrf.mxu1 }
 0x21e   :  { %725 = vrot.lane.b32.xlu1 %v570_v7, %s1853_s30 }
 0x21f   :  { %v1726_v8 = vpop.f32.mrf.mxu1 }
 0x221   :  { %v645_v9 = vpop.f32.mrf.mxu0 }
 0x222   :  { %729 = vrot.lane.b32.xlu0 %v645_v9, %s1860_s3 }
 0x223   :  { %v1733_v10 = vpop.f32.mrf.mxu0 }
 0x225   :  { %v720_v11 = vpop.f32.mrf.mxu1 }
 0x226   :  { %733 = vrot.lane.b32.xlu1 %v720_v11, %s1861_s12 }
 0x227   :  { %v1740_v12 = vpop.f32.mrf.mxu1 }
 0x228   :  { %v1381_v12 = vld [vmem:[%s2090_s1] sm:$0xff] }
 0x229   :  { %v807_v13 = vpop.f32.mrf.mxu0 }
 0x22b   :  { %v809_v14 = vpop.f32.mrf.mxu0 }
 0x22d   :  { %v877_v15 = vpop.f32.mrf.mxu1 }
 0x22e   :  { %v878_v16 = vadd.f32 %v877_v15, %v807_v13 }
 0x22f   :  { %v879_v17 = vpop.f32.mrf.mxu1 }
 0x230   :  { %v881_v18 = vmul.f32 0.03125, %v878_v16 }
 0x231   :  { %v952_v19 = vpop.f32.mrf.mxu0 }
 0x232   :  { %1603 = vmatmul.mubr.msk.f32.vlgmr.msra.gmra.mxu0 %vm89_vm1, %v881_v18  ;;  %1604 = vmatmul.mubr.msk.f32.vlgmr.msra.gmra.mxu1 %vm89_vm1, %v881_v18  ;;  %v1027_v26 = vmul.f32 %v881_v18, %v881_v18 }
 0x233   :  { %v954_v20 = vpop.f32.mrf.mxu0  ;;  %1210 = vmatpush1.msra.mxu0 %v1995_v52  ;;  %1281 = vmatpush1.msra.mxu1 %v2010_v61 }
 0x234   :  { %1211 = vmatprep.subr.mxu0 %v2002_v54  ;;  %1282 = vmatprep.subr.mxu1 %v2014_v62  ;;  %v68_v62 = vld [vmem:[#allocation6 + $0x1] ss:$8 sm:$0xf] }
 0x235   :  { %v1022_v21 = vpop.f32.mrf.mxu1  ;;  %1212 = vmatpush1.msra.mxu0 %v2008_v60  ;;  %1283 = vmatpush1.msra.mxu1 %v79_v63  ;;  %v70_v63 = vld [vmem:[#allocation6 + $0x2] ss:$8 sm:$0xf]  ;;  %v1335_v1 = vrot.slane %v68_v62, %v1965_v25  ;;  %v1343_v4 = vrot.slane %v68_v62, %v1986_v39  ;;  %v1339_v10 = vrot.slane %v68_v62, %v1980_v36 }
 0x236   :  { %v1023_v22 = vadd.f32 %v1022_v21, %v952_v19  ;;  %1245 = vmatprep.mubr.f32.mxu0 %v1855_v0  ;;  %1316 = vmatprep.mubr.f32.mxu1 %v1855_v0  ;;  %v1763_v0 = vld [vmem:[#allocation4 + $0x48] ss:$16 sps:$4 sm:$0xff]   ;;  %v1360_v8 = vrot.slane %v70_v63, %v1965_v25  ;;  %v1347_v25 = vrot.slane %v68_v62, %v1988_v40  ;;  %v1385_v21 = vmul.f32 0.1, %v1381_v12 }
 0x237   :  { %v1024_v23 = vpop.f32.mrf.mxu1  ;;  %1501 = vmatprep.subr.bf16.mxu0 %v1756_v29  ;;  %1541 = vmatprep.subr.bf16.mxu1 %v1759_v32  ;;  %v1364_v18 = vrot.slane %v70_v63, %v1980_v36  ;;  %v1372_v20 = vrot.slane %v70_v63, %v1988_v40 }
 0x238   :  { %v1026_v24 = vmul.f32 0.03125, %v1023_v22 }
 0x23a   :  { %v1028_v27 = vsub.f32 %v1026_v24, %v1027_v26 }
 0x23c   :  { %1605 = vmatmul.mubr.msk.f32.vlgmr.msra.gmra.mxu0 %vm89_vm1, %v1028_v27  ;;  %1606 = vmatmul.mubr.msk.f32.vlgmr.msra.gmra.mxu1 %vm89_vm1, %v1028_v27 }
 0x23d   :  { %1502 = vmatpush1.bf16.xpose.msra.mxu0 %v1754_v28  ;;  %1542 = vmatpush1.bf16.xpose.msra.mxu1 %v1757_v30 }
 0x23e   :  { %1503 = vmatprep.subr.bf16.mxu0 %v1762_v33  ;;  %1543 = vmatprep.subr.bf16.mxu1 %v1765_v34 }
 0x245   :  { %1504 = vmatpush1.bf16.xpose.msra.mxu0 %v1760_v35  ;;  %1544 = vmatpush1.bf16.xpose.msra.mxu1 %v1763_v0 }
 0x246   :  { %1505 = vmatprep.subr.bf16.mxu0 %v1768_v37  ;;  %1545 = vmatprep.subr.bf16.mxu1 %v1771_v38 }
 0x24d   :  { %1506 = vmatpush1.bf16.xpose.msra.mxu0 %v1766_v41  ;;  %1546 = vmatpush1.bf16.xpose.msra.mxu1 %v1769_v42 }
 0x24e   :  { %1507 = vmatprep.subr.bf16.mxu0 %v1774_v44  ;;  %1547 = vmatprep.subr.bf16.mxu1 %v1777_v45 }
 0x255   :  { %1508 = vmatpush1.bf16.xpose.msra.mxu0 %v1772_v46  ;;  %1548 = vmatpush1.bf16.xpose.msra.mxu1 %v1775_v47 }
 0x2f2   :  { %v1098_v48 = vpop.f32.mrf.mxu0  ;;  %v1169_v49 = vpop.f32.mrf.mxu1 }
 0x2f3   :  { %v1174_v2 = vsub.f32 %v1971_v31, %v1098_v48  ;;  %v1176_v6 = vsub.f32 %v1999_v53, %v1169_v49  ;;  %v1368_v31 = vrot.slane %v70_v63, %v1986_v39  ;;  %v1382_v53 = vld [vmem:[%s2090_s1 + $0x8] sm:$0xff]  ;;  %v1384_v39 = vld [vmem:[%s2090_s1 + $0x18] sm:$0xff] }
 0x2f4   :  { %v1100_v50 = vpop.f32.mrf.mxu0  ;;  %v1171_v51 = vpop.f32.mrf.mxu1  ;;  %v1386_v24 = vmul.f32 0.1, %v1382_v53  ;;  %v1388_v29 = vmul.f32 0.1, %v1384_v39 }
 0x2f5   :  { %v1175_v9 = vsub.f32 %v1990_v43, %v1100_v50  ;;  %v1177_v14 = vsub.f32 %v2004_v59, %v1171_v51  ;;  %v1383_v43 = vld [vmem:[%s2090_s1 + $0x10] sm:$0xff]  ;;  %s1862_s1 = smov 64  }
 0x2f6   :  { %v1387_v27 = vmul.f32 0.1, %v1383_v43 }
 0x2fc   :  { %v1247_v52 = vpop.f32.mrf.mxu0  ;;  %v1318_v54 = vpop.f32.mrf.mxu1 }
 0x2fd   :  { %v1248_v55 = vadd.f32 1e-05, %v1247_v52  ;;  %v1319_v56 = vadd.f32 1e-05, %v1318_v54  ;;  %v726_v52 = vpop.permute.xlu1 %725  ;;  %v730_v54 = vpop.permute.xlu0 %729 }
 0x2fe   :  { %v1249_v57 = vpop.f32.mrf.mxu0  ;;  %v1320_v58 = vpop.f32.mrf.mxu1 }
 0x2ff   :  { %1778 = vrsqrt.f32 %v1248_v55  ;;  %v1250_v60 = vadd.f32 1e-05, %v1249_v57  ;;  %v1321_v61 = vadd.f32 1e-05, %v1320_v58  ;;  %v71_v58 = vld [vmem:[#allocation6 + $0x3] ss:$0 sm:$0xff] }
 0x300   :  { %1780 = vrsqrt.f32 %v1319_v56  ;;  %v736_v56 = vsel %vm89_vm1, %v2046_v5, %v726_v52 }
 0x301   :  { %1782 = vrsqrt.f32 %v1250_v60  ;;  %v734_v55 = vpop.permute.xlu1 %733  ;;  %v738_v57 = vsel %vm737_vm2, %v736_v56, %v730_v54 }
 0x302   :  { %1784 = vrsqrt.f32 %v1321_v61  ;;  %v740_v60 = vsel %vm739_vm3, %v738_v57, %v734_v55 }
 0x30c   :  { %v1779_v3 = vpop.eup %1778 }
 0x30d   :  { %v1781_v7 = vpop.eup %1780  ;;  %v1327_v11 = vmul.f32 %v1779_v3, %v1174_v2 }
 0x30e   :  { %v1783_v13 = vpop.eup %1782  ;;  %v1329_v15 = vmul.f32 %v1781_v7, %v1176_v6 }
 0x30f   :  { %v1785_v16 = vpop.eup %1784  ;;  %v1328_v17 = vmul.f32 %v1783_v13, %v1175_v9  ;;  %v1352_v59 = vmul.f32 %v1335_v1, %v1327_v11 }
 0x310   :  { %v1330_v19 = vmul.f32 %v1785_v16, %v1177_v14  ;;  %v1354_v22 = vmul.f32 %v1343_v4, %v1329_v15 }
 0x311   :  { %v1353_v23 = vmul.f32 %v1339_v10, %v1328_v17  ;;  %v1377_v26 = vadd.f32 %v1360_v8, %v1352_v59 }
 0x312   :  { %v1355_v28 = vmul.f32 %v1347_v25, %v1330_v19  ;;  %v1379_v30 = vadd.f32 %v1368_v31, %v1354_v22 }
 0x313   :  { %v1378_v32 = vadd.f32 %v1364_v18, %v1353_v23  ;;  %v1389_v36 = vadd.f32 %v1385_v21, %v1377_v26 }
 0x314   :  { %v1380_v33 = vadd.f32 %v1372_v20, %v1355_v28  ;;  %v1391_v35 = vadd.f32 %v1387_v27, %v1379_v30 }
 0x315   :  { %v1390_v34 = vadd.f32 %v1386_v24, %v1378_v32  ;;  %v1393_v41 = vpack.c.bf16 %v1389_v36, %v1389_v36 }
 0x316   :  { %v1392_v0 = vadd.f32 %v1388_v29, %v1380_v33  ;;  %v1395_v40 = vpack.c.bf16 %v1391_v35, %v1391_v35 }
 0x317   :  { %v1394_v37 = vpack.c.bf16 %v1390_v34, %v1390_v34 }
 0x318   :  { %v1396_v38 = vpack.c.bf16 %v1392_v0, %v1392_v0 }
 0x319   :  { %1525 = vmatprep.mubr.bf16.mxu0 %v1394_v37 }
 0x31a   :  { %1565 = vmatprep.mubr.bf16.mxu1 %v1396_v38  ;;  %1526 = vmatmul.mubr.bf16.vlgmr.msra.gmra.mxu0 %v1393_v41 }
 0x31b   :  { %1566 = vmatmul.mubr.bf16.vlgmr.msra.gmra.mxu1 %v1395_v40 }
 0x3da   :  { %v1527_v42 = vpop.f32.mrf.mxu0 }
 0x3db   :  { %v1567_v44 = vpop.f32.mrf.mxu1 }
 0x3dc   :  { %v1568_v45 = vadd.f32 %v1567_v44, %v1527_v42  ;;  %v1529_v46 = vpop.f32.mrf.mxu0 }
 0x3dd   :  { %v1569_v47 = vpop.f32.mrf.mxu1 }
 0x3de   :  { %1574 = vrot.lane.b32.xlu0 %v1568_v45, %s1862_s1  ;;  %v1530_v48 = vpop.f32.mrf.mxu0 }
 0x3df   :  { %v1570_v49 = vpop.f32.mrf.mxu1 }
 0x3e0   :  { %v1531_v50 = vpop.f32.mrf.mxu0 }
 0x3e1   :  { %v1571_v51 = vpop.f32.mrf.mxu1 }
 0x450   :  { %v1575_v61 = vpop.permute.xlu0 %1574 }
 0x451   :  { %v1578_v62 = vsel %vm1577_vm4, %v740_v60, %v1575_v61 }
 0x452   :  { %v1579_v63 = vadd.f32 %v1578_v62, %v71_v58 }
 0x454   :  { %1580 = vst [vmem:[%s2096_s7] sm:$0xff] %v1579_v63 }
 0x455   :  { %1585 = vsyncpa [#allocation3], 1 }
 0x456   :  { %1586 = vsyncpa [#allocation5], 1 }

</bundles_post_ra>
